<compile_context>
chip_gen: v7x
topology: tpu7x:2x2x1
jax: 0.10.0
libtpu: 0.0.40
codegen_flags: <defaults>
</compile_context>

<pallas_src>
import math
from typing import NamedTuple

import jax
import jax.numpy as jnp
from jax.experimental import pallas as pl
from jax.experimental.pallas import tpu as pltpu

_LANE = 128


def _round_up(x, n):
    return ((x + n - 1) // n) * n


# ----------------------------------------------------------------------------
# Kernels
# ----------------------------------------------------------------------------
def _ffn_kernel_single(x_ref, w1t_ref, w2t_ref, o_ref):
    # x: (tm, vis_p); w1t: (vis_p, hid_p); w2t: (hid_p, vis_p); o: (tm, vis_p)
    h = jnp.dot(x_ref[...], w1t_ref[...], preferred_element_type=jnp.float32)
    h = jnp.maximum(h, 0.0)  # ReLU in f32
    out = jnp.dot(h.astype(w2t_ref.dtype), w2t_ref[...],
                  preferred_element_type=jnp.float32)
    o_ref[...] = out.astype(o_ref.dtype)


def _ffn_kernel_tiled(x_ref, w1t_ref, w2t_ref, o_ref, acc_ref):
    # grid = (M tiles [parallel], hidden tiles [arbitrary, innermost])
    # x: (tm, vis_p); w1t: (vis_p, th); w2t: (th, vis_p); acc: (tm, vis_p) f32
    j = pl.program_id(1)

    @pl.when(j == 0)
    def _():
        acc_ref[...] = jnp.zeros_like(acc_ref)

    h = jnp.dot(x_ref[...], w1t_ref[...], preferred_element_type=jnp.float32)
    h = jnp.maximum(h, 0.0)  # ReLU is elementwise -> exact per hidden chunk
    acc_ref[...] += jnp.dot(h.astype(w2t_ref.dtype), w2t_ref[...],
                            preferred_element_type=jnp.float32)

    @pl.when(j == pl.num_programs(1) - 1)
    def _():
        o_ref[...] = acc_ref[...].astype(o_ref.dtype)


# ----------------------------------------------------------------------------
# Parameter preparation (do once, at load time)
# ----------------------------------------------------------------------------
class PreparedFFN(NamedTuple):
    w1t: jax.Array          # (vis_p, hid_p) row-major, zero-padded, compute dtype
    w2t: jax.Array          # (hid_p, vis_p)
    vis_dim: int
    hidden: int
    compute_dtype: jnp.dtype


def prepare_ffn_weights(w1, w2, compute_dtype=None):
    """Transpose + lane-pad + cast PyTorch-layout weights once."""
    hidden, vis_dim = w1.shape
    assert w2.shape == (vis_dim, hidden)
    if compute_dtype is None:
        compute_dtype = w1.dtype
    compute_dtype = jnp.dtype(compute_dtype)
    vis_p = _round_up(vis_dim, _LANE)
    hid_p = _round_up(hidden, _LANE)
    w1t = jnp.zeros((vis_p, hid_p), compute_dtype).at[:vis_dim, :hidden].set(
        w1.T.astype(compute_dtype))
    w2t = jnp.zeros((hid_p, vis_p), compute_dtype).at[:hidden, :vis_dim].set(
        w2.T.astype(compute_dtype))
    return PreparedFFN(w1t, w2t, int(vis_dim), int(hidden), compute_dtype)


# ----------------------------------------------------------------------------
# Forward pass
# ----------------------------------------------------------------------------
def poswise_ffn(x, weights: PreparedFFN, *, tm=512, th=512,
                vmem_budget_bytes=48 * 1024 * 1024):
    """relu(x @ W1.T) @ W2.T with pre-prepared weights.

    `vmem_budget_bytes` bounds VMEM tile residency (default 48 MiB -> safe on
    v7x's 64 MiB/TC; raise to ~96 MiB on 128 MiB v5e/v6e parts if desired).
    """
    vis_dim, hidden = weights.vis_dim, weights.hidden
    assert x.shape[-1] == vis_dim
    cdt = weights.compute_dtype
    out_dtype = x.dtype
    vis_p, hid_p = weights.w1t.shape

    lead = x.shape[:-1]
    m = int(math.prod(lead)) if lead else 1
    x2d = x.reshape(m, vis_dim)
    if x2d.dtype != cdt:
        x2d = x2d.astype(cdt)
    if vis_p != vis_dim:
        # Feature-axis zero pad only when vis_dim is not lane-aligned (exact).
        x2d = jnp.zeros((m, vis_p), cdt).at[:, :vis_dim].set(x2d)

    csize = jnp.dtype(cdt).itemsize
    osize = jnp.dtype(out_dtype).itemsize
    sub = 16 if cdt == jnp.bfloat16 else 8

    # ---- row tile --------------------------------------------------------
    tm_eff = max(sub, min(_round_up(tm, sub), _round_up(m, sub)))
    if m > sub and pl.cdiv(m, tm_eff) < 2:
        # >= 2 M steps so the "parallel" axis can split over v7x's 2 TCs.
        tm_eff = max(sub, _round_up(pl.cdiv(m, 2), sub))

    def fixed_bytes(t):
        # x (double-buffered) + out (double-buffered) + f32 accumulator.
        return 2 * t * vis_p * csize + 2 * t * vis_p * osize + t * vis_p * 4

    while tm_eff > 2 * sub and fixed_bytes(tm_eff) > vmem_budget_bytes // 2:
        tm_eff = max(sub, _round_up(tm_eff // 2, sub))
    n_m = pl.cdiv(m, tm_eff)

    # ---- hidden tile (reduction axis -> must divide hid_p exactly) --------
    def weight_bytes(t):
        # w1/w2 chunks double-buffered + the f32 `h` intermediate.
        return 2 * 2 * vis_p * t * csize + tm_eff * t * 4

    q = hid_p // _LANE
    cands = [d * _LANE for d in sorted(
        (d for d in range(1, q + 1) if q % d == 0), reverse=True)]
    th_eff = cands[-1]  # smallest (=128) as a fallback
    th_cap = max(_round_up(th, _LANE), _LANE)
    for t in cands:
        if t <= th_cap and fixed_bytes(tm_eff) + weight_bytes(t) <= vmem_budget_bytes:
            th_eff = t
            break
    n_h = hid_p // th_eff

    vmem_limit = int(min(100 * 1024 * 1024,
                         vmem_budget_bytes + 8 * 1024 * 1024))
    cost = pl.CostEstimate(
        flops=4 * m * vis_p * hid_p,
        transcendentals=0,
        bytes_accessed=(m * vis_p * (csize + osize)
                        + 2 * vis_p * hid_p * csize * (n_m if n_h > 1 else 1)))

    if n_h == 1:
        # Whole hidden dim fits: weights stay VMEM-resident across the M loop.
        grid_spec = pltpu.PrefetchScalarGridSpec(
            num_scalar_prefetch=0,
            grid=(n_m,),
            in_specs=[
                pl.BlockSpec((tm_eff, vis_p), lambda i: (i, 0)),
                pl.BlockSpec((vis_p, hid_p), lambda i: (0, 0)),
                pl.BlockSpec((hid_p, vis_p), lambda i: (0, 0)),
            ],
            out_specs=pl.BlockSpec((tm_eff, vis_p), lambda i: (i, 0)))
        kernel = _ffn_kernel_single
        semantics = ("parallel",)
    else:
        grid_spec = pltpu.PrefetchScalarGridSpec(
            num_scalar_prefetch=0,
            grid=(n_m, n_h),
            in_specs=[
                pl.BlockSpec((tm_eff, vis_p), lambda i, j: (i, 0)),
                pl.BlockSpec((vis_p, th_eff), lambda i, j: (0, j)),
                pl.BlockSpec((th_eff, vis_p), lambda i, j: (j, 0)),
            ],
            out_specs=pl.BlockSpec((tm_eff, vis_p), lambda i, j: (i, 0)),
            scratch_shapes=[pltpu.VMEM((tm_eff, vis_p), jnp.float32)])
        kernel = _ffn_kernel_tiled
        semantics = ("parallel", "arbitrary")

    out = pl.pallas_call(
        kernel,
        out_shape=jax.ShapeDtypeStruct((m, vis_p), out_dtype),
        grid_spec=grid_spec,
        compiler_params=pltpu.CompilerParams(
            dimension_semantics=semantics,
            vmem_limit_bytes=vmem_limit),
        cost_estimate=cost,
    )(x2d, weights.w1t, weights.w2t)

    if vis_p != vis_dim:
        out = out[:, :vis_dim]
    return out.reshape(*lead, vis_dim)


def poswise_ffn_raw(x, w1, w2, *, compute_dtype=None, **kw):
    """Convenience: prepare weights per call (testing only)."""
    return poswise_ffn(x, prepare_ffn_weights(w1, w2, compute_dtype), **kw)


def _reference(x, w1, w2):
    hp = jax.lax.Precision.HIGHEST
    h = jnp.maximum(jnp.einsum("...d,hd->...h", x, w1, precision=hp), 0.0)
    return jnp.einsum("...h,dh->...d", h, w2, precision=hp)


if __name__ == "__main__":
    key = jax.random.PRNGKey(0)
    k_x, k_w1, k_w2, k_x2, k_w3, k_w4 = jax.random.split(key, 6)

    # ---- small shape, f32 (bit-close to the PyTorch module) --------------
    batch, seq, vis_dim = 2, 8, 32
    hidden = vis_dim // 4  # 8
    x = jax.random.normal(k_x, (batch, seq, vis_dim), dtype=jnp.float32)
    # PyTorch Linear weight layout: (out_features, in_features).
    w1 = jax.random.normal(k_w1, (hidden, vis_dim), dtype=jnp.float32) * 0.1
    w2 = jax.random.normal(k_w2, (vis_dim, hidden), dtype=jnp.float32) * 0.1
    ref = _reference(x, w1, w2)

    prep_f32 = prepare_ffn_weights(w1, w2)           # done once, reused per call
    out = jax.block_until_ready(poswise_ffn(x, prep_f32))
    assert out.shape == (batch, seq, vis_dim)
    assert jnp.allclose(out, ref, atol=1e-5, rtol=1e-5)

    # ---- bf16 compute path (perf option; f32 accumulation) ---------------
    prep_bf16 = prepare_ffn_weights(w1, w2, compute_dtype=jnp.bfloat16)
    out_bf16 = jax.block_until_ready(poswise_ffn(x, prep_bf16))
    assert out_bf16.shape == (batch, seq, vis_dim)
    assert jnp.allclose(out_bf16, ref, atol=5e-2, rtol=5e-2)

    # ---- hidden-tiled accumulation path (exercises the 2-D grid kernel) --
    vis2 = 1024
    hid2 = vis2 // 4  # 256 -> hid_p = 256, th=128 -> 2 hidden steps
    x2 = jax.random.normal(k_x2, (batch, seq, vis2), dtype=jnp.float32)
    w3 = jax.random.normal(k_w3, (hid2, vis2), dtype=jnp.float32) * 0.05
    w4 = jax.random.normal(k_w4, (vis2, hid2), dtype=jnp.float32) * 0.05
    ref2 = _reference(x2, w3, w4)
    out2 = jax.block_until_ready(
        poswise_ffn(x2, prepare_ffn_weights(w3, w4), th=128))
    assert out2.shape == (batch, seq, vis2)
    assert jnp.allclose(out2, ref2, atol=2e-2, rtol=2e-2)

    print("KERNEL_OK")
</pallas_src>

<mosaic_0001>
module attributes {stable_mosaic.version = 11 : i64} {
  func.func @_ffn_kernel_single(%arg0: i32, %arg1: memref<8x128xf32, #tpu.memory_space<vmem>>, %arg2: memref<128x128xf32, #tpu.memory_space<vmem>>, %arg3: memref<128x128xf32, #tpu.memory_space<vmem>>, %arg4: memref<8x128xf32, #tpu.memory_space<vmem>>) attributes {dimension_semantics = [#tpu.dimension_semantics<parallel>], iteration_bounds = array<i64: 2>, scalar_prefetch = 0 : i64, scratch_operands = 0 : i64, tpu.core_type = #tpu.core_type<tc>, window_params = [{transform_indices = @transform_0, window_bounds = array<i64: 8, 128>}, {pipeline_mode = #tpu.pipeline_mode<synchronous>, transform_indices = @transform_1, window_bounds = array<i64: 128, 128>}, {pipeline_mode = #tpu.pipeline_mode<synchronous>, transform_indices = @transform_2, window_bounds = array<i64: 128, 128>}, {transform_indices = @transform_3, window_bounds = array<i64: 8, 128>}]} {
    %c0 = arith.constant 0 : index
    %c0_0 = arith.constant 0 : index
    %0 = vector.load %arg1[%c0, %c0_0] : memref<8x128xf32, #tpu.memory_space<vmem>>, vector<8x128xf32>
    %c0_1 = arith.constant 0 : index
    %c0_2 = arith.constant 0 : index
    %1 = vector.load %arg2[%c0_1, %c0_2] : memref<128x128xf32, #tpu.memory_space<vmem>>, vector<128x128xf32>
    %cst = arith.constant dense<0.000000e+00> : vector<8x128xf32>
    %2 = tpu.matmul %0, %1, %cst {dimension_numbers = #tpu.dot_dimension_numbers<[1], [0], [0], [1], [0, 0, 1, 1], [], []>} : vector<8x128xf32>, vector<128x128xf32>, vector<8x128xf32> -> vector<8x128xf32>
    %cst_3 = arith.constant 0.000000e+00 : f32
    %3 = vector.broadcast %cst_3 : f32 to vector<8x128xf32>
    %4 = arith.maximumf %2, %3 : vector<8x128xf32>
    %c0_4 = arith.constant 0 : index
    %c0_5 = arith.constant 0 : index
    %5 = vector.load %arg3[%c0_4, %c0_5] : memref<128x128xf32, #tpu.memory_space<vmem>>, vector<128x128xf32>
    %cst_6 = arith.constant dense<0.000000e+00> : vector<8x128xf32>
    %6 = tpu.matmul %4, %5, %cst_6 {dimension_numbers = #tpu.dot_dimension_numbers<[1], [0], [0], [1], [0, 0, 1, 1], [], []>} : vector<8x128xf32>, vector<128x128xf32>, vector<8x128xf32> -> vector<8x128xf32>
    %c0_7 = arith.constant 0 : index
    %c0_8 = arith.constant 0 : index
    %7 = vector.load %arg4[%c0_7, %c0_8] : memref<8x128xf32, #tpu.memory_space<vmem>>, vector<8x128xf32>
    tpu.vector_store %arg4[%c0_7, %c0_8], %6 {strides = array<i32>} : memref<8x128xf32, #tpu.memory_space<vmem>>, vector<8x128xf32>,
    return
  }
  func.func @transform_0(%arg0: i32) -> (i32, i32) {
    %c0_i32 = arith.constant 0 : i32
    %c0_i32_0 = arith.constant 0 : i32
    return %arg0, %c0_i32 : i32, i32
  }
  func.func @transform_1(%arg0: i32) -> (i32, i32) {
    %c0_i32 = arith.constant 0 : i32
    %c0_i32_0 = arith.constant 0 : i32
    %c0_i32_1 = arith.constant 0 : i32
    return %c0_i32, %c0_i32_0 : i32, i32
  }
  func.func @transform_2(%arg0: i32) -> (i32, i32) {
    %c0_i32 = arith.constant 0 : i32
    %c0_i32_0 = arith.constant 0 : i32
    %c0_i32_1 = arith.constant 0 : i32
    return %c0_i32, %c0_i32_0 : i32, i32
  }
  func.func @transform_3(%arg0: i32) -> (i32, i32) {
    %c0_i32 = arith.constant 0 : i32
    %c0_i32_0 = arith.constant 0 : i32
    return %arg0, %c0_i32 : i32, i32
  }
}

</mosaic_0001>

<bundles_post_ra>
// kernel: tpu_custom_call.1
= control target key start
LH: loop header
LB: loop body
LE: loop exit
PB: predicated region body
PF: predicated region fallthrough
CT: control target
= control target key end

     0   :  { %8 = vsyncpa [#allocation3], 0  ;;  %s1172_s0 = inlined_call_operand.hbm [shape: f32[16,128], index: 0, kind: input, shape index: {}]   ;;  %s1173_s1 = inlined_call_operand.hbm [shape: f32[128,128], index: 1, kind: input, shape index: {}]   ;;  %s1174_s2 = inlined_call_operand.hbm [shape: f32[128,128], index: 2, kind: input, shape index: {}]   ;;  %s1175_s3 = inlined_call_operand.hbm [shape: f32[16,128], index: 3, kind: output, shape index: {}]  }
   0x1   :  { %10 = vsyncpa [#allocation3 + $0x1], 0 }
   0x2   :  { %11 = vsyncpa [#allocation6], 0 }
   0x3   :  { %12 = vsyncpa [#allocation4], 0 }
   0x4   :  { %14 = vsyncpa [#allocation4 + $0x1], 0  ;;  %s920_s12 = smov 0   ;;  %s922_s13 = smov 0  }
   0x5   :  { %s924_s14 = smov 0   ;;  %s926_s15 = smov 0  }
   0x6 LB: > { %s941_s16 = sadd.s32 4294967295, %s889_s15   ;;  %s493_s17 = sadd.s32 4294967294, %s889_s15   ;;  %s889_s15 = sphi %s926_s15, %s1195_s15   ;;  %s885_s14 = sphi %s924_s14, %s1194_s14   ;;  %s881_s13 = sphi %s922_s13, %s1193_s13   ;;  %s877_s12 = sphi %s920_s12, %s1192_s12  }
   0x7   : > { %p40_p0 = scmp.ne.s32.totalorder %s881_s13, %s877_s12  ;;  %p1176_p1 = scmp.eq.s32.totalorder %s941_s16, 0 }
   0x8   : > { %p112_p3 = scmp.eq.s32.totalorder %s493_s17, 1  ;;  %p494_p5 = scmp.ge.s32.totalorder %s889_s15, 1 }
   0x9   : > { %p950_p4 = por %p1176_p1, %p40_p0  ;;  %p119_p7 = scmp.lt.s32.totalorder %s889_s15, 3 }
   0xa   : > { %p955_p6 = por %p112_p3, %p40_p0  ;;  %s891_s21 = smov [#allocation5]  }
   0xb   : > { %s1179_s18 = scalar_select %p950_p4, 1, 0 }
   0xc   : > { %s1180_s19 = scalar_select %p955_p6, 1, 0 }
   0xd   : > { %p960_p8 = pnand %p494_p5, %p119_p7  ;;  %s131_s22 = sshll.u32 %s891_s21, 4  ;;  %s964_s22 = int_to_ptr.vmem [resolvable:$true] %s131_s22 }
   0xe   : > { %s892_s24 = smov [#allocation7]   ;;  %s733_s28 = scalar_lea.hbm %s1173_s1, 2048 }
   0xf   : > { %p673_p9 = pneg %p960_p8  ;;  %s144_s25 = sshll.u32 %s892_s24, 4  ;;  %s975_s25 = int_to_ptr.vmem [resolvable:$true] %s144_s25 }
  0x10   : > { %p734_p12 = scmp.ne.s32.totalorder %s1173_s1, %s733_s28  ;;  %p740_p5 = scmp.lt.u32.totalorder %s733_s28, %s1173_s1 }
  0x11   : > { %p971_p11 = pnand %p673_p9, %p1176_p1 }
  0x13   : > { %p735_p13 = pneg %p971_p11 }
  0x15   : > { %p736_p0 = pnand %p735_p13, %p734_p12 }
  0x17   : > { %p737_p3 = pneg %p736_p0 }
  0x19   : > { %p742_p7 = pnand %p740_p5, %p737_p3 }
  0x1b   : > { %745 = shalt.err (!%p742_p7)
}
  0x1c   : > { %s746_s6 = scalar_lea.vmem %s964_s22, 2048  ;;  %p754_p2 = scmp.lt.s32.totalorder %s964_s22, %s964_s22 }
  0x1d   : > { %p747_p9 = scmp.ne.s32.totalorder %s964_s22, %s746_s6  ;;  %p755_p12 = scmp.lt.s32.totalorder %s746_s6, %s746_s6 }
  0x1f   : > { %p749_p10 = pnand %p747_p9, %p735_p13  ;;  %p756_p0 = por %p755_p12, %p754_p2 }
  0x21   : > { %p750_p1 = pneg %p749_p10 }
  0x23   : > { %p757_p6 = pnand %p756_p0, %p750_p1 }
  0x25   : > { %760 = shalt.err (!%p757_p6)
}
  0x26   : > { %s893_s7 = smov 128   ;;  %s894_s8 = smov 8  }
  0x27   : > { %676 = dma.hbm_to_vmem [thread:$0]  (!%p971_p11), %s1173_s1, 2048, %s964_s22, [#allocation6], %s893_s7, %s893_s7, %s894_s8  }
  0x28   : > { %s761_s21 = scalar_lea.hbm %s1174_s2, 2048 }
  0x29   : > { %p762_p2 = scmp.ne.s32.totalorder %s1174_s2, %s761_s21  ;;  %p768_p10 = scmp.lt.u32.totalorder %s761_s21, %s1174_s2 }
  0x2b   : > { %p764_p1 = pnand %p762_p2, %p735_p13 }
  0x2d   : > { %p765_p6 = pneg %p764_p1 }
  0x2f   : > { %p770_p3 = pnand %p768_p10, %p765_p6 }
  0x31   : > { %773 = shalt.err (!%p770_p3)
}
  0x32   : > { %s774_s22 = scalar_lea.vmem %s975_s25, 2048  ;;  %p782_p12 = scmp.lt.s32.totalorder %s975_s25, %s975_s25 }
  0x33   : > { %p775_p5 = scmp.ne.s32.totalorder %s975_s25, %s774_s22  ;;  %p783_p0 = scmp.lt.s32.totalorder %s774_s22, %s774_s22 }
  0x35   : > { %p777_p7 = pnand %p775_p5, %p735_p13  ;;  %p784_p2 = por %p783_p0, %p782_p12 }
  0x37   : > { %p778_p9 = pneg %p777_p7 }
  0x39   : > { %p785_p1 = pnand %p784_p2, %p778_p9 }
  0x3b   : > { %788 = shalt.err (!%p785_p1)
}
  0x3c   : > { %679 = dma.hbm_to_vmem [thread:$0]  (!%p971_p11), %s1174_s2, 2048, %s975_s25, [#allocation6], %s893_s7, %s893_s7, %s894_s8  }
  0x3d   : > { %s1030_s4 = sadd.s32 1, %s889_s15   ;;  %s27_s23 = sadd.s32 1, %s885_s14 }
  0x3e   : > { %s24_s5 = ssub.s32 %s889_s15, %s1030_s4  ;;  %p34_p13 = scmp.ne.s32.totalorder %s885_s14, %s881_s13 }
  0x3f   : > { %p25_p6 = scmp.eq.s32.totalorder %s24_s5, 0  ;;  %p35_p10 = scmp.eq.s32.totalorder %s889_s15, 0 }
  0x40   : > { %p1183_p3 = scmp.eq.s32.totalorder %s941_s16, 1  ;;  %p690_p7 = scmp.lt.s32.totalorder %s889_s15, 2 }
  0x41   : > { %s1046_s9 = scalar_select %p25_p6, %s885_s14, %s27_s23  }
  0x42   : > { %p1040_p5 = por %p1183_p3, %p34_p13  ;;  %p36_p9 = por %p35_p10, %p34_p13 }
  0x43   : > { %s158_s10 = sand.u32 1, %s885_s14   ;;  %s499_s25 = sshll.u32 %s889_s15, 7 }
  0x44   : > { %s1184_s6 = scalar_select %p1040_p5, 1, 0 }
  0x45   : > { %s498_s11 = sshll.u32 %s158_s10, 3  ;;  %s1053_s17 = scalar_lea.hbm %s1172_s0, %s499_s25 }
  0x46   : > { %s162_s21 = scalar_lea.vmem [#allocation2], %s498_s11  ;;  %p1057_p11 = pnand %p690_p7, %p36_p9 }
  0x47   : > { %s169_s24 = sshll.u32 %s162_s21, 4  ;;  %s159_s27 = scalar_lea.sflag [#allocation3], %s158_s10  ;;  %s1055_s24 = int_to_ptr.vmem [resolvable:$true] %s169_s24 }
  0x48   : > { %s789_s28 = scalar_lea.hbm %s1053_s17, 128  ;;  %p791_p0 = pneg %p1057_p11 }
  0x49   : > { %p790_p12 = scmp.ne.s32.totalorder %s1053_s17, %s789_s28  ;;  %s794_s30 = scalar_lea.hbm %s1172_s0, 256 }
  0x4a   : > { %p795_p13 = scmp.lt.u32.totalorder %s1053_s17, %s1172_s0  ;;  %p796_p6 = scmp.lt.u32.totalorder %s794_s30, %s789_s28 }
  0x4b   : > { %p792_p2 = pnand %p791_p0, %p790_p12  ;;  %p798_p3 = scmp.lt.u32.totalorder %s789_s28, %s1053_s17 }
  0x4c   : > { %p797_p10 = por %p796_p6, %p795_p13 }
  0x4d   : > { %p793_p1 = pneg %p792_p2 }
  0x4e   : > { %p799_p7 = por %p798_p3, %p797_p10 }
  0x50   : > { %p800_p9 = pnand %p799_p7, %p793_p1 }
  0x52   : > { %803 = shalt.err (!%p800_p9)
}
  0x53   : > { %s804_s10 = scalar_lea.vmem %s1055_s24, 128  ;;  %s895_s11 = smov [#allocation2]  }
  0x54   : > { %p805_p12 = scmp.ne.s32.totalorder %s1055_s24, %s804_s10  ;;  %s809_s25 = sshll.u32 %s895_s11, 4  ;;  %s810_s25 = int_to_ptr.vmem [resolvable:$false] %s809_s25 }
  0x55   : > { %s811_s7 = scalar_lea.vmem %s810_s25, 256  ;;  %p812_p4 = scmp.lt.s32.totalorder %s1055_s24, %s810_s25 }
  0x56   : > { %p807_p2 = pnand %p805_p12, %p791_p0  ;;  %p813_p13 = scmp.lt.s32.totalorder %s811_s7, %s804_s10 }
  0x58   : > { %p808_p5 = pneg %p807_p2  ;;  %p814_p6 = por %p813_p13, %p812_p4 }
  0x5a   : > { %p815_p10 = pnand %p814_p6, %p808_p5 }
  0x5c   : > { %818 = shalt.err (!%p815_p10)
}
  0x5d   : > { %683 = dma.hbm_to_vmem [thread:$0]  (!%p1057_p11), %s1053_s17, 128, %s1055_s24, %s159_s27  }
  0x5e   : > { %178 = sbr.rel (%p960_p8) target bundleno = 579 (0x243), region = 32  ;;  %s1089_s8 = sand.u32 (!%p960_p8), 1, %s881_s13  }
  0x5f   : > { %s501_s21 = sshll.u32 (!%p960_p8), %s1089_s8, 3  ;;  %s181_s28 = scalar_lea.sflag (!%p960_p8), [#allocation3], %s1089_s8 }
  0x60   : > { %s1095_s22 = scalar_lea.vmem (!%p960_p8), [#allocation2], %s501_s21  ;;  %p1186_p4 = scmp.ne.s32.totalorder (!%p960_p8), %s1179_s18, 0 }
  0x65   : > { %864 = dma.done.wait (%p1186_p4), %s181_s28, 128  }
  0x66   : > { %866 = vsyncadd (%p1186_p4), %s181_s28, 4294967168  ;;  %p1187_p5 = scmp.eq.s32.totalorder %s941_s16, 0 }
  0x68   : > { %868 = dma.done.wait (%p1187_p5), [#allocation6], 4096   ;;  %p1188_p8 = pmov %p1187_p5 }
  0x69   : > { %v896_v0 = vmov 0.0|0.0   ;;  %vm897_vm0 = vmmov 0   ;;  %v898_v1 = vmov 0.0   ;;  %v216_v2 = vld [vmem:[#allocation5] sm:$0xff]  ;;  %v217_v3 = vld [vmem:[#allocation5 + $0x8] sm:$0xff]  ;;  %v218_v4 = vld [vmem:[#allocation5 + $0x10] sm:$0xff] }
  0x6a   : > { %870 = vsyncadd (%p1188_p8), [#allocation6], 4294963200  ;;  %613 = vmatprep.subr.bf16.mxu0 %v896_v0  ;;  %575 = vmatprep.mubr.msk.f32.mxu0 %vm897_vm0, %v898_v1  ;;  %v614_v5 = vpack.c.bf16 %v217_v3, %v216_v2  ;;  %v219_v6 = vld [vmem:[#allocation5 + $0x18] sm:$0xff]  ;;  %v220_v8 = vld [vmem:[#allocation5 + $0x20] sm:$0xff]  ;;  %s214_s18 = scalar_lea.vmem [#allocation8], %s501_s21  ;;  %s506_s17 = sshll.u32 %s941_s16, 7 }
  0x6b   : > { %637 = vmatprep.subr.bf16.mxu1 %v896_v0  ;;  %610 = vmatprep.mubr.msk.f32.mxu1 %vm897_vm0, %v898_v1  ;;  %v617_v7 = vpack.c.bf16 %v219_v6, %v218_v4  ;;  %v221_v9 = vld [vmem:[#allocation5 + $0x28] sm:$0xff]  ;;  %v303_v10 = vld [vmem:[#allocation7] sm:$0xff]  ;;  %v305_v12 = vld [vmem:[#allocation7 + $0x10] sm:$0xff]  ;;  %s404_s20 = sshll.u32 %s214_s18, 4  ;;  %s1130_s27 = scalar_lea.hbm %s1175_s3, %s506_s17  ;;  %s1125_s20 = int_to_ptr.vmem [resolvable:$true] %s404_s20 }
  0x6c   : > { %615 = vmatpush3.bf16.msra.mxu0 %v614_v5  ;;  %v304_v11 = vld [vmem:[#allocation7 + $0x8] sm:$0xff]  ;;  %v306_v13 = vld [vmem:[#allocation7 + $0x18] sm:$0xff]  ;;  %v620_v14 = vpack.c.bf16 %v221_v9, %v220_v8  ;;  %v222_v16 = vld [vmem:[#allocation5 + $0x30] sm:$0xff]  ;;  %s391_s29 = scalar_lea.sflag [#allocation4], %s1089_s8  ;;  %s819_s30 = scalar_lea.vmem %s1125_s20, 128 }
  0x6d   : > { %616 = vmatprep.subr.bf16.mxu0 %v896_v0  ;;  %v638_v15 = vpack.c.bf16 %v304_v11, %v303_v10  ;;  %v223_v17 = vld [vmem:[#allocation5 + $0x38] sm:$0xff]  ;;  %v641_v18 = vpack.c.bf16 %v306_v13, %v305_v12  ;;  %v307_v19 = vld [vmem:[#allocation7 + $0x20] sm:$0xff]  ;;  %v308_v20 = vld [vmem:[#allocation7 + $0x28] sm:$0xff]  ;;  %p820_p11 = scmp.ne.s32.totalorder %s1125_s20, %s819_s30  ;;  %p1189_p0 = scmp.ne.s32.totalorder %s1184_s6, 0 }
  0x6e   : > { %v623_v21 = vpack.c.bf16 %v223_v17, %v222_v16  ;;  %v224_v22 = vld [vmem:[#allocation5 + $0x40] sm:$0xff]  ;;  %v225_v23 = vld [vmem:[#allocation5 + $0x48] sm:$0xff]  ;;  %v644_v24 = vpack.c.bf16 %v308_v20, %v307_v19  ;;  %v309_v25 = vld [vmem:[#allocation7 + $0x30] sm:$0xff]  ;;  %s899_s16 = smov [#allocation8]  }
  0x6f   : > { %639 = vmatpush3.bf16.msra.mxu1 %v638_v15  ;;  %v310_v26 = vld [vmem:[#allocation7 + $0x38] sm:$0xff]  ;;  %v626_v27 = vpack.c.bf16 %v225_v23, %v224_v22  ;;  %v226_v28 = vld [vmem:[#allocation5 + $0x50] sm:$0xff]  ;;  %v311_v31 = vld [vmem:[#allocation7 + $0x40] sm:$0xff]  ;;  %p821_p1 = pnand %p820_p11, %p1189_p0  ;;  %s823_s23 = sshll.u32 %s899_s16, 4  ;;  %s824_s23 = int_to_ptr.vmem [resolvable:$false] %s823_s23 }
  0x70   : > { %618 = vmatpush3.bf16.msra.mxu0 %v617_v7  ;;  %640 = vmatprep.subr.bf16.mxu1 %v896_v0  ;;  %v227_v29 = vld [vmem:[#allocation5 + $0x58] sm:$0xff]  ;;  %v647_v30 = vpack.c.bf16 %v310_v26, %v309_v25  ;;  %v312_v32 = vld [vmem:[#allocation7 + $0x48] sm:$0xff]  ;;  %v228_v34 = vld [vmem:[#allocation5 + $0x60] sm:$0xff]  ;;  %s825_s5 = scalar_lea.vmem %s824_s23, 256  ;;  %p826_p7 = scmp.lt.s32.totalorder %s1125_s20, %s824_s23 }
  0x71   : > { %619 = vmatprep.subr.bf16.mxu0 %v896_v0  ;;  %v629_v33 = vpack.c.bf16 %v227_v29, %v226_v28  ;;  %v229_v35 = vld [vmem:[#allocation5 + $0x68] sm:$0xff]  ;;  %v650_v36 = vpack.c.bf16 %v312_v32, %v311_v31  ;;  %v313_v37 = vld [vmem:[#allocation7 + $0x50] sm:$0xff]  ;;  %v314_v38 = vld [vmem:[#allocation7 + $0x58] sm:$0xff]  ;;  %p822_p3 = pneg %p821_p1  ;;  %p827_p9 = scmp.lt.s32.totalorder %s825_s5, %s819_s30 }
  0x72   : > { %v632_v39 = vpack.c.bf16 %v229_v35, %v228_v34  ;;  %v230_v40 = vld [vmem:[#allocation5 + $0x70] sm:$0xff]  ;;  %v231_v41 = vld [vmem:[#allocation5 + $0x78] sm:$0xff]  ;;  %v653_v42 = vpack.c.bf16 %v314_v38, %v313_v37  ;;  %v315_v43 = vld [vmem:[#allocation7 + $0x60] sm:$0xff] }
  0x73   : > { %642 = vmatpush3.bf16.msra.mxu1 %v641_v18  ;;  %v316_v44 = vld [vmem:[#allocation7 + $0x68] sm:$0xff]  ;;  %v635_v45 = vpack.c.bf16 %v231_v41, %v230_v40  ;;  %v215_v47 = vld [vmem:[%s1095_s22] sm:$0xff]  ;;  %p828_p12 = por %p827_p9, %p826_p7 }
  0x74   : > { %621 = vmatpush3.bf16.msra.mxu0 %v620_v14  ;;  %643 = vmatprep.subr.bf16.mxu1 %v896_v0  ;;  %v656_v46 = vpack.c.bf16 %v316_v44, %v315_v43  ;;  %v317_v48 = vld [vmem:[#allocation7 + $0x70] sm:$0xff]  ;;  %v318_v49 = vld [vmem:[#allocation7 + $0x78] sm:$0xff] }
  0x75   : > { %622 = vmatprep.subr.bf16.mxu0 %v896_v0  ;;  %v659_v50 = vpack.c.bf16 %v318_v49, %v317_v48  ;;  %p829_p2 = pnand %p828_p12, %p822_p3 }
  0x77   : > { %645 = vmatpush3.bf16.msra.mxu1 %v644_v24 }
  0x78   : > { %624 = vmatpush3.bf16.msra.mxu0 %v623_v21  ;;  %646 = vmatprep.subr.bf16.mxu1 %v896_v0 }
  0x79   : > { %625 = vmatprep.subr.bf16.mxu0 %v896_v0 }
  0x7b   : > { %648 = vmatpush3.bf16.msra.mxu1 %v647_v30 }
  0x7c   : > { %627 = vmatpush3.bf16.msra.mxu0 %v626_v27  ;;  %649 = vmatprep.subr.bf16.mxu1 %v896_v0 }
  0x7d   : > { %628 = vmatprep.subr.bf16.mxu0 %v896_v0 }
  0x7f   : > { %651 = vmatpush3.bf16.msra.mxu1 %v650_v36 }
  0x80   : > { %630 = vmatpush3.bf16.msra.mxu0 %v629_v33  ;;  %652 = vmatprep.subr.bf16.mxu1 %v896_v0 }
  0x81   : > { %631 = vmatprep.subr.bf16.mxu0 %v896_v0 }
  0x83   : > { %654 = vmatpush3.bf16.msra.mxu1 %v653_v42 }
  0x84   : > { %633 = vmatpush3.bf16.msra.mxu0 %v632_v39  ;;  %655 = vmatprep.subr.bf16.mxu1 %v896_v0 }
  0x85   : > { %634 = vmatprep.subr.bf16.mxu0 %v896_v0 }
  0x87   : > { %657 = vmatpush3.bf16.msra.mxu1 %v656_v46 }
  0x88   : > { %636 = vmatpush3.bf16.msra.mxu0 %v635_v45  ;;  %658 = vmatprep.subr.bf16.mxu1 %v896_v0 }
  0x8b   : > { %576 = vmatmul.mubr.f32.vlgmr.msra.gmra.mrb[0].mxu0 %v215_v47  ;;  %660 = vmatpush3.bf16.msra.mxu1 %v659_v50 }
 0x15e   : > { %v298_v51 = vpop.f32.mrb[0].mxu0 }
 0x15f   : > { %v302_v52 = vmax.f32 %v298_v51, 0.0  ;;  %v577_v53 = vpop.f32.mrb[1].mxu0 }
 0x161   : > { %611 = vmatmul.mubr.f32.vlgmr.msra.gmra.mrb[0].mxu1 %v302_v52 }
 0x234   : > { %v385_v54 = vpop.f32.mrb[0].mxu1 }
 0x235   : > { %389 = vst [vmem:[%s214_s18] sm:$0xff] %v385_v54  ;;  %v612_v55 = vpop.f32.mrb[1].mxu1 }
 0x236   : > { %832 = shalt.err (!%p829_p2)
}
 0x237   : > { %s833_s10 = scalar_lea.hbm %s1130_s27, 128  ;;  %s837_s7 = scalar_lea.hbm %s1175_s3, 256 }
 0x238   : > { %p834_p13 = scmp.ne.s32.totalorder %s1130_s27, %s833_s10  ;;  %p838_p4 = scmp.lt.u32.totalorder %s1130_s27, %s1175_s3 }
 0x239   : > { %p839_p5 = scmp.lt.u32.totalorder %s837_s7, %s833_s10  ;;  %p841_p11 = scmp.lt.u32.totalorder %s833_s10, %s1130_s27 }
 0x23a   : > { %p835_p6 = pnand %p834_p13, %p1189_p0 }
 0x23b   : > { %p840_p8 = por %p839_p5, %p838_p4 }
 0x23c   : > { %p836_p10 = pneg %p835_p6 }
 0x23d   : > { %p842_p1 = por %p841_p11, %p840_p8 }
 0x23f   : > { %p843_p3 = pnand %p842_p1, %p836_p10 }
 0x241   : > { %846 = shalt.err (!%p843_p3)
}
 0x242   : > { %671 = dma.vmem_to_hbm [thread:$0]  (%p1189_p0), %s1125_s20, 128, %s1130_s27, %s391_s29  }
 0x243 PF: > { %s416_s28 = sand.u32 1, %s877_s12   ;;  %p1190_p7 = scmp.ne.s32.totalorder %s1180_s19, 0 }
 0x244   : > { %p1191_p9 = scmp.ge.s32.totalorder %s889_s15, 2  ;;  %s417_s22 = scalar_lea.sflag [#allocation4], %s416_s28 }
 0x246   : > { %p685_p12 = pnand %p1191_p9, %p1190_p7 }
 0x248   : > { %872 = dma.done.wait (!%p685_p12), %s417_s22, 128  }
 0x249   : > { %874 = vsyncadd (!%p685_p12), %s417_s22, 4294967168  ;;  %p17_p2 = scmp.ge.s32.totalorder %s1030_s4, 4   ;;  %s1192_s12 = smov %s881_s13 }
 0x24a   : > { %s1193_s13 = smov %s885_s14  ;;  %s1194_s14 = smov %s1046_s9 }
 0x24b   : > { %s1195_s15 = smov %s1030_s4  ;;  %19 = sbr.rel (!%p17_p2) target bundleno = 6 (0x6), region = 85 }
 0x252   :  { %422 = vsyncpa [#allocation3], 1 }
 0x253   :  { %424 = vsyncpa [#allocation3 + $0x1], 1 }
 0x254   :  { %425 = vsyncpa [#allocation6], 1 }
 0x255   :  { %426 = vsyncpa [#allocation4], 1 }
 0x256   :  { %428 = vsyncpa [#allocation4 + $0x1], 1 }

</bundles_post_ra>
